<compile_context>
chip_gen: v5e
topology: v5e:2x2
jax: 0.10.0
libtpu: 0.0.40
codegen_flags: <defaults>
</compile_context>

<pallas_src>
from collections import namedtuple

import numpy as np
import jax
import jax.numpy as jnp
from jax.experimental import pallas as pl
from jax.experimental.pallas import tpu as pltpu


Tensor = namedtuple("Tensor", ("name", "dtype", "shape"))


# -----------------------------------------------------------------------------
# Hardware sizing helpers (generation-aware VMEM budget / megacore detection).
# -----------------------------------------------------------------------------
def _tpu_vmem_capacity_bytes():
    """Physical per-TensorCore VMEM: 128 MiB on v5e/v6e, 64 MiB on v7x."""
    try:
        info = pltpu.get_tpu_info()
        cap = int(getattr(info, "vmem_capacity_bytes", 0) or 0)
        if cap > 0:
            return cap
    except Exception:
        pass
    try:
        kind = jax.devices()[0].device_kind.lower()
        if "v7" in kind:
            return 64 << 20
        if "v6" in kind or "v5" in kind:
            return 128 << 20
    except Exception:
        pass
    return 64 << 20          # conservative default (smallest per-TC VMEM)


def _num_tensorcores():
    """TensorCores one pallas_call can span via a 'parallel' grid axis.
    v5e/v6e expose one TC per device; v7x exposes two (megacore)."""
    try:
        kind = jax.devices()[0].device_kind.lower()
    except Exception:
        return 1
    return 2 if "v7" in kind else 1


def _pick_block_batch(n, h, wcin, wcout_t, budget, num_cores):
    """Images per grid step.  Large Nb keeps M = Nb*H per MXU push big and
    amortizes the ~0.35us per-step pipeline overhead; the only caps are the
    generation-aware VMEM budget and, on 2-TC parts (v7x megacore), leaving
    >= num_cores grid steps on the batch axis.  On v5e/v6e (single TC) the
    grid is a serial loop, so Nb is NOT halved there."""
    per_img = (2 * h * wcin * 4          # double-buffered input block (f32)
               + 2 * h * wcout_t * 4     # double-buffered output block (f32)
               + 3 * h * wcin * 2        # bf16 shifted-LHS values
               + h * wcout_t * 4)        # f32 accumulator values
    nb = max(1, min(n, budget // max(per_img, 1)))
    if num_cores > 1:
        nb = min(nb, max(1, n // num_cores))
    return nb


# -----------------------------------------------------------------------------
# "Engine build": conv weights -> lane-dense banded matrices (rows 0+1 K-packed).
# -----------------------------------------------------------------------------
def _build_banded_weights(w_oihw, w):
    """OIHW conv weights -> banded (block-Toeplitz) matrices such that
       out_row(y) = x_row(y-1) @ W0 + x_row(y) @ W1 + x_row(y+1) @ W2
    with rows outside [0,H) zero.  SAME padding along W is folded in
    (out-of-range taps are zero).  Kernel rows 0 and 1 are concatenated along K
    so the kernel issues two MXU pushes (K=2*W*Cin, K=W*Cin) instead of three
    half-depth ones (fills the 256-deep v6e/v7x MXU)."""
    cout, cin, kh, kw = w_oihw.shape
    assert kh == 3 and kw == 3
    w_np = np.asarray(w_oihw, dtype=np.float32)
    band = np.zeros((3, w * cin, w * cout), dtype=np.float32)
    for dy in range(3):
        for dx in range(3):
            blk = w_np[:, :, dy, dx].T                        # (Cin, Cout)
            for xo in range(w):
                xi = xo + dx - 1
                if 0 <= xi < w:
                    band[dy,
                         xi * cin:(xi + 1) * cin,
                         xo * cout:(xo + 1) * cout] = blk
    w01 = np.concatenate([band[0], band[1]], axis=0)          # (2*W*Cin, W*Cout)
    return (jnp.asarray(w01, dtype=jnp.bfloat16),
            jnp.asarray(band[2], dtype=jnp.bfloat16))


# -----------------------------------------------------------------------------
# Pallas kernel.
# -----------------------------------------------------------------------------
def _engine_block_kernel(x_ref, w01_ref, w2_ref, b_ref, o_ref):
    """One grid step: Nb images x full H x one output-channel (W*Cout) tile.

    x_ref  : (Nb, H, W*Cin)   f32 lane-dense input block (NHWC, minor dims merged)
    w01_ref: (2*W*Cin, TN)    bf16 banded weights, kernel rows 0+1 packed along K
    w2_ref : (W*Cin, TN)      bf16 banded weights, kernel row 2
    b_ref  : (1, TN)          f32 bias tile (W-major, Cout-minor)
    o_ref  : (Nb, H, TN)      output block (lane-dense, 128-multiple stores)
    """
    nb, H, WCin = x_ref.shape
    tn = o_ref.shape[2]
    m = nb * H

    # Flatten (Nb, H) -> rows; free, layout-preserving (lanes stay W*Cin wide).
    x2 = x_ref[...].reshape(m, WCin)

    # SAME padding along H without a VMEM staging copy: the +/-1-row shifted LHS
    # comes from an XLU sublane roll + boundary mask.  The wrapped rows are
    # exactly the per-image boundary rows, which SAME padding zeroes anyway
    # (so rolling across image boundaries inside the flattened block is safe).
    row = jax.lax.broadcasted_iota(jnp.int32, (m, 1), 0) % H
    x_up = jnp.where(row == 0, 0.0,
                     pltpu.roll(x2, shift=1, axis=0))          # x[y-1]
    x_dn = jnp.where(row == H - 1, 0.0,
                     pltpu.roll(x2, shift=m - 1, axis=0))      # == roll by -1: x[y+1]

    # Two MXU pushes instead of three; single f32->bf16 cast per operand;
    # f32 accumulation initialized from the first matmul (no zeros + add pass).
    lhs01 = jnp.concatenate([x_up, x2], axis=-1).astype(jnp.bfloat16)   # (m, 2*WCin)
    lhs2 = x_dn.astype(jnp.bfloat16)                                    # (m, WCin)
    acc = jnp.dot(lhs01, w01_ref[...], preferred_element_type=jnp.float32)
    acc = acc + jnp.dot(lhs2, w2_ref[...], preferred_element_type=jnp.float32)
    # TODO(synk): at engine-scale M (Nb*H >= ~256) carry `acc` in an f32 VMEM
    #             scratch (acc_ref[...] +=) instead of a traced value to avoid
    #             vreg spills (and use the MRB in-place accumulate on v7x).

    # f32 epilogue (v5e VPU/EUP have no bf16): bias + SiLU.  If the epilogue
    # ever binds, switch to acc * pl.reciprocal(1 + jnp.exp(-acc), approx=True).
    acc = acc + b_ref[...]
    acc = acc * jax.nn.sigmoid(acc)
    o_ref[...] = acc.reshape(nb, H, tn).astype(o_ref.dtype)


# -----------------------------------------------------------------------------
# Wrapper: tiling decisions + pallas_call.
# -----------------------------------------------------------------------------
def conv3x3_silu_pallas(x_nhwc, w01, w2, b_flat):
    """Conv2d(k=3, s=1, SAME) + bias + SiLU.  NHWC in / NHWC out."""
    n, h, w, cin = x_nhwc.shape
    wcin = w * cin
    wcout = w2.shape[1]
    cout = wcout // w
    assert w01.shape == (2 * wcin, wcout) and b_flat.shape == (1, wcout)

    cap = _tpu_vmem_capacity_bytes()
    budget = int(cap * 0.65)        # ~42 MiB on v7x (64 MiB/TC), ~83 MiB on v5e/v6e
    num_cores = _num_tensorcores()

    # Output-channel (N) tiling: keep the banded weights fully VMEM-resident
    # (single-buffered) when they fit; otherwise tile W*Cout in 128-lane
    # multiples so stores stay unmasked and weight VMEM stays bounded.
    w_bytes = (w01.size + w2.size) * 2
    resident_w = (w_bytes <= budget // 4) or (wcout % 128 != 0)
    if resident_w:
        tn = wcout
    else:
        per_col = 3 * wcin * 2 * 2              # bf16, double-buffered, per lane
        tn = min(wcout, max(128, ((budget // 4) // per_col) // 128 * 128))
        while wcout % tn:
            tn -= 128

    nb = _pick_block_batch(n, h, wcin, tn, budget, num_cores)

    # Pad the batch to a multiple of nb (a ragged/prime batch must not force
    # nb down to 1 and M = H per matmul).
    n_pad = pl.cdiv(n, nb) * nb
    x_flat = x_nhwc.reshape(n, h, wcin)         # free reshape: lanes = W*Cin
    if n_pad != n:
        x_flat = jnp.pad(x_flat, ((0, n_pad - n), (0, 0), (0, 0)))

    grid = (n_pad // nb, wcout // tn)

    # Honest VMEM accounting -> explicit vmem limit (defaults are 16/32 MiB).
    in_blk, out_blk = nb * h * wcin * 4, nb * h * tn * 4
    wb_blk = 3 * wcin * tn * 2 + tn * 4
    vals = nb * h * (3 * wcin) * 2 + nb * h * tn * 4
    live = 2 * in_blk + 2 * out_blk + (1 if resident_w else 2) * wb_blk + vals
    vmem_limit = int(min(cap * 0.9, max(2 * live + (8 << 20), 32 << 20)))

    def _wspec(shape, index_map):
        if not resident_w:
            return pl.BlockSpec(shape, index_map)
        try:    # grid-invariant residents: drop the dead second pipeline buffer
            return pl.BlockSpec(shape, index_map, pipeline_mode=pl.Buffered(1))
        except TypeError:
            return pl.BlockSpec(shape, index_map)

    out_flat = pl.pallas_call(
        _engine_block_kernel,
        out_shape=jax.ShapeDtypeStruct((n_pad, h, wcout), x_nhwc.dtype),
        grid_spec=pltpu.PrefetchScalarGridSpec(
            num_scalar_prefetch=0,
            grid=grid,
            in_specs=[
                pl.BlockSpec((nb, h, wcin), lambda i, j: (i, 0, 0)),
                _wspec((2 * wcin, tn), lambda i, j: (0, j)),
                _wspec((wcin, tn), lambda i, j: (0, j)),
                _wspec((1, tn), lambda i, j: (0, j)),
            ],
            out_specs=pl.BlockSpec((nb, h, tn), lambda i, j: (i, 0, j)),
        ),
        compiler_params=pltpu.CompilerParams(
            dimension_semantics=("parallel", "parallel"),
            vmem_limit_bytes=vmem_limit),
    )(x_flat, w01, w2, b_flat)

    out = out_flat[:n] if n_pad != n else out_flat
    # Free reshape back: split the minor dim into (W, Cout).
    return out.reshape(n, h, w, cout)


# -----------------------------------------------------------------------------
# Module mirroring TRTModule's binding bookkeeping.
# -----------------------------------------------------------------------------
class TRTModulePallas:
    """Mirrors TRTModule's binding bookkeeping; engine execution -> Pallas kernel.

    The synthetic engine is "built" channels-last (NHWC), so there are no layout
    transposes or padding HBM passes around the kernel at runtime."""

    def __init__(self, key, cin=8, cout=16, h=16, w=16):
        kw_, kb_ = jax.random.split(key)
        self.cin, self.cout, self.h, self.w = cin, cout, h, w
        # Deterministic synthetic "engine weights" (conv OIHW + bias).
        self.weight = (jax.random.normal(kw_, (cout, cin, 3, 3), jnp.float32)
                       * (1.0 / jnp.sqrt(cin * 9.0)))
        self.bias = jax.random.normal(kb_, (cout,), jnp.float32) * 0.1
        # One-time "engine build": banded weights (rows 0+1 K-packed) + W-tiled bias.
        self.w01, self.w2 = _build_banded_weights(self.weight, w)
        self.b_flat = jnp.tile(self.bias, (w,)).reshape(1, w * cout)

        # Binding bookkeeping mirroring TRTModule.__init_bindings (NHWC engine).
        self.num_inputs = 1
        self.num_outputs = 1
        self.num_bindings = 2
        self.input_names = ["images"]
        self.output_names = ["output"]
        self.inp_info = [Tensor("images", jnp.float32, (-1, h, w, cin))]
        self.out_info = [Tensor("output", jnp.float32, (-1, h, w, cout))]
        self.idynamic = True
        self.odynamic = True

    def __call__(self, *inputs):
        assert len(inputs) == self.num_inputs
        contiguous_inputs = [jnp.asarray(i) for i in inputs]
        outputs = [conv3x3_silu_pallas(contiguous_inputs[0],
                                       self.w01, self.w2, self.b_flat)]
        return tuple(outputs) if len(outputs) > 1 else outputs[0]


if __name__ == "__main__":
    key = jax.random.PRNGKey(0)
    k_mod, k_x = jax.random.split(key)

    module = TRTModulePallas(k_mod, cin=8, cout=16, h=16, w=16)
    x = jax.random.normal(k_x, (2, 16, 16, 8), jnp.float32)   # NHWC input binding

    out = module(x)
    out = jax.block_until_ready(out)
    assert out.shape == (2, 16, 16, 16)

    # Reference: same conv + bias + SiLU with operands rounded to bf16 exactly as
    # the kernel's MXU path does (accumulation is f32 in both), keeping it tight.
    xr = x.astype(jnp.bfloat16).astype(jnp.float32)
    wr = module.weight.astype(jnp.bfloat16).astype(jnp.float32)
    ref = jax.lax.conv_general_dilated(
        xr, wr, window_strides=(1, 1), padding="SAME",
        dimension_numbers=("NHWC", "OIHW", "NHWC"))
    ref = ref + module.bias.reshape(1, 1, 1, -1)
    ref = ref * jax.nn.sigmoid(ref)
    assert jnp.allclose(out, ref, rtol=5e-3, atol=5e-3), \
        float(jnp.max(jnp.abs(out - ref)))

    print("KERNEL_OK")
</pallas_src>

<mosaic_0001>
module attributes {stable_mosaic.version = 11 : i64} {
  func.func @_engine_block_kernel(%arg0: i32, %arg1: i32, %arg2: memref<2x16x128xf32, #tpu.memory_space<vmem>>, %arg3: memref<256x256xbf16, #tpu.memory_space<vmem>>, %arg4: memref<128x256xbf16, #tpu.memory_space<vmem>>, %arg5: memref<1x256xf32, #tpu.memory_space<vmem>>, %arg6: memref<2x16x256xf32, #tpu.memory_space<vmem>>) attributes {dimension_semantics = [#tpu.dimension_semantics<parallel>, #tpu.dimension_semantics<parallel>], iteration_bounds = array<i64: 1, 1>, scalar_prefetch = 0 : i64, scratch_operands = 0 : i64, tpu.core_type = #tpu.core_type<tc>, window_params = [{transform_indices = @transform_0, window_bounds = array<i64: 2, 16, 128>}, {pipeline_mode = #tpu.pipeline_mode<synchronous>, transform_indices = @transform_1, window_bounds = array<i64: 256, 256>}, {pipeline_mode = #tpu.pipeline_mode<synchronous>, transform_indices = @transform_2, window_bounds = array<i64: 128, 256>}, {pipeline_mode = #tpu.pipeline_mode<synchronous>, transform_indices = @transform_3, window_bounds = array<i64: 1, 256>}, {transform_indices = @transform_4, window_bounds = array<i64: 2, 16, 256>}]} {
    %c0 = arith.constant 0 : index
    %c0_0 = arith.constant 0 : index
    %c0_1 = arith.constant 0 : index
    %0 = vector.load %arg2[%c0, %c0_0, %c0_1] : memref<2x16x128xf32, #tpu.memory_space<vmem>>, vector<2x16x128xf32>
    %1 = vector.shape_cast %0 : vector<2x16x128xf32> to vector<32x128xf32>
    %2 = tpu.iota {dimensions = array<i32: 0>} : vector<32x1xi32>
    %c16_i32 = arith.constant 16 : i32
    %c0_i32 = arith.constant 0 : i32
    %3 = arith.cmpi eq, %c16_i32, %c0_i32 : i32
    %c1_i32 = arith.constant 1 : i32
    %4 = arith.select %3, %c1_i32, %c16_i32 : i32
    %5 = vector.broadcast %4 : i32 to vector<32x1xi32>
    %6 = arith.remsi %2, %5 : vector<32x1xi32>
    %c0_i32_2 = arith.constant 0 : i32
    %7 = vector.broadcast %c0_i32_2 : i32 to vector<32x1xi32>
    %8 = arith.cmpi ne, %6, %7 : vector<32x1xi32>
    %c0_i32_3 = arith.constant 0 : i32
    %9 = vector.broadcast %c0_i32_3 : i32 to vector<32x1xi32>
    %10 = arith.cmpi slt, %6, %9 : vector<32x1xi32>
    %c0_i32_4 = arith.constant 0 : i32
    %11 = arith.cmpi slt, %4, %c0_i32_4 : i32
    %12 = vector.broadcast %11 : i1 to vector<32x1xi1>
    %13 = vector.broadcast %12 : vector<32x1xi1> to vector<32x1xi1>
    %14 = arith.xori %10, %13 : vector<32x1xi1>
    %15 = arith.andi %14, %8 : vector<32x1xi1>
    %16 = vector.broadcast %4 : i32 to vector<32x1xi32>
    %17 = arith.addi %6, %16 : vector<32x1xi32>
    %18 = arith.select %15, %17, %6 : vector<32x1xi1>, vector<32x1xi32>
    %c0_i32_5 = arith.constant 0 : i32
    %19 = vector.broadcast %c0_i32_5 : i32 to vector<32x1xi32>
    %20 = arith.cmpi eq, %18, %19 : vector<32x1xi32>
    %c1_i32_6 = arith.constant 1 : i32
    %21 = tpu.dynamic_rotate %1 by %c1_i32_6 dim 0 : vector<32x128xf32>, i32 -> vector<32x128xf32>
    %cst = arith.constant 0.000000e+00 : f32
    %22 = vector.shape_cast %20 : vector<32x1xi1> to vector<32x1xi1>
    %23 = vector.broadcast %22 : vector<32x1xi1> to vector<32x128xi1>
    %24 = vector.broadcast %cst : f32 to vector<32x128xf32>
    %25 = arith.select %23, %24, %21 : vector<32x128xi1>, vector<32x128xf32>
    %c15_i32 = arith.constant 15 : i32
    %26 = vector.broadcast %c15_i32 : i32 to vector<32x1xi32>
    %27 = arith.cmpi eq, %18, %26 : vector<32x1xi32>
    %c31_i32 = arith.constant 31 : i32
    %28 = tpu.dynamic_rotate %1 by %c31_i32 dim 0 : vector<32x128xf32>, i32 -> vector<32x128xf32>
    %cst_7 = arith.constant 0.000000e+00 : f32
    %29 = vector.shape_cast %27 : vector<32x1xi1> to vector<32x1xi1>
    %30 = vector.broadcast %29 : vector<32x1xi1> to vector<32x128xi1>
    %31 = vector.broadcast %cst_7 : f32 to vector<32x128xf32>
    %32 = arith.select %30, %31, %28 : vector<32x128xi1>, vector<32x128xf32>
    %33 = tpu.concatenate %25, %1 in 1 : vector<32x128xf32>, vector<32x128xf32> -> vector<32x256xf32>
    %34 = arith.truncf %33 : vector<32x256xf32> to vector<32x256xbf16>
    %35 = arith.truncf %32 : vector<32x128xf32> to vector<32x128xbf16>
    %c0_8 = arith.constant 0 : index
    %c0_9 = arith.constant 0 : index
    %36 = vector.load %arg3[%c0_8, %c0_9] : memref<256x256xbf16, #tpu.memory_space<vmem>>, vector<256x256xbf16>
    %cst_10 = arith.constant dense<0.000000e+00> : vector<32x256xf32>
    %37 = tpu.matmul %34, %36, %cst_10 {dimension_numbers = #tpu.dot_dimension_numbers<[1], [0], [0], [1], [0, 0, 1, 1], [], []>} : vector<32x256xbf16>, vector<256x256xbf16>, vector<32x256xf32> -> vector<32x256xf32>
    %c0_11 = arith.constant 0 : index
    %c0_12 = arith.constant 0 : index
    %38 = vector.load %arg4[%c0_11, %c0_12] : memref<128x256xbf16, #tpu.memory_space<vmem>>, vector<128x256xbf16>
    %cst_13 = arith.constant dense<0.000000e+00> : vector<32x256xf32>
    %39 = tpu.matmul %35, %38, %cst_13 {dimension_numbers = #tpu.dot_dimension_numbers<[1], [0], [0], [1], [0, 0, 1, 1], [], []>} : vector<32x128xbf16>, vector<128x256xbf16>, vector<32x256xf32> -> vector<32x256xf32>
    %40 = arith.addf %37, %39 : vector<32x256xf32>
    %c0_14 = arith.constant 0 : index
    %c0_15 = arith.constant 0 : index
    %41 = vector.load %arg5[%c0_14, %c0_15] : memref<1x256xf32, #tpu.memory_space<vmem>>, vector<1x256xf32>
    %42 = vector.broadcast %41 : vector<1x256xf32> to vector<32x256xf32>
    %43 = arith.addf %40, %42 : vector<32x256xf32>
    %44 = arith.negf %43 : vector<32x256xf32>
    %45 = math.exp %44 : vector<32x256xf32>
    %cst_16 = arith.constant 1.000000e+00 : f32
    %46 = vector.broadcast %cst_16 : f32 to vector<32x256xf32>
    %47 = arith.addf %46, %45 : vector<32x256xf32>
    %48 = arith.divf %46, %47 : vector<32x256xf32>
    %49 = arith.mulf %43, %48 : vector<32x256xf32>
    %50 = vector.shape_cast %49 : vector<32x256xf32> to vector<2x16x256xf32>
    %c0_17 = arith.constant 0 : index
    %c0_18 = arith.constant 0 : index
    %c0_19 = arith.constant 0 : index
    %51 = vector.load %arg6[%c0_17, %c0_18, %c0_19] : memref<2x16x256xf32, #tpu.memory_space<vmem>>, vector<2x16x256xf32>
    tpu.vector_store %arg6[%c0_17, %c0_18, %c0_19], %50 {strides = array<i32>} : memref<2x16x256xf32, #tpu.memory_space<vmem>>, vector<2x16x256xf32>,
    return
  }
  func.func @transform_0(%arg0: i32, %arg1: i32) -> (i32, i32, i32) {
    %c0_i32 = arith.constant 0 : i32
    %c0_i32_0 = arith.constant 0 : i32
    %c0_i32_1 = arith.constant 0 : i32
    return %arg0, %c0_i32, %c0_i32_0 : i32, i32, i32
  }
  func.func @transform_1(%arg0: i32, %arg1: i32) -> (i32, i32) {
    %c0_i32 = arith.constant 0 : i32
    %c0_i32_0 = arith.constant 0 : i32
    return %c0_i32, %arg1 : i32, i32
  }
  func.func @transform_2(%arg0: i32, %arg1: i32) -> (i32, i32) {
    %c0_i32 = arith.constant 0 : i32
    %c0_i32_0 = arith.constant 0 : i32
    return %c0_i32, %arg1 : i32, i32
  }
  func.func @transform_3(%arg0: i32, %arg1: i32) -> (i32, i32) {
    %c0_i32 = arith.constant 0 : i32
    %c0_i32_0 = arith.constant 0 : i32
    return %c0_i32, %arg1 : i32, i32
  }
  func.func @transform_4(%arg0: i32, %arg1: i32) -> (i32, i32, i32) {
    %c0_i32 = arith.constant 0 : i32
    %c0_i32_0 = arith.constant 0 : i32
    return %arg0, %c0_i32, %arg1 : i32, i32, i32
  }
}

</mosaic_0001>

<bundles_post_ra>
// kernel: tpu_custom_call.1
= control target key start
LH: loop header
LB: loop body
LE: loop exit
PB: predicated region body
PF: predicated region fallthrough
CT: control target
= control target key end

     0   :  { %9 = vsyncpa [#allocation3], 0  ;;  %s1427_s0 = inlined_call_operand.hbm [shape: f32[2,16,128], index: 0, kind: input, shape index: {}]   ;;  %s1428_s1 = inlined_call_operand.hbm [shape: bf16[256,256], index: 1, kind: input, shape index: {}]   ;;  %s1429_s2 = inlined_call_operand.hbm [shape: bf16[128,256], index: 2, kind: input, shape index: {}]   ;;  %s1430_s3 = inlined_call_operand.vmem [shape: f32[1,256], index: 3, kind: input, shape index: {}]   ;;  %s1431_s4 = inlined_call_operand.hbm [shape: f32[2,16,256], index: 4, kind: output, shape index: {}]  }
   0x1   :  { %10 = vsyncpa [#allocation6], 0 }
   0x2   :  { %11 = vsyncpa [#allocation4], 0  ;;  %s29_s17 = sshll.u32 %s1428_s1, 4  ;;  %s1225_s18 = smov [#allocation5]   ;;  %s30_s17 = int_to_ptr.hbm [resolvable:$true] %s29_s17 }
   0x3   :  { %s31_s19 = sshll.u32 %s1225_s18, 4  ;;  %s16_s22 = sshll.u32 %s1427_s0, 4  ;;  %s32_s19 = int_to_ptr.vmem [resolvable:$true] %s31_s19  ;;  %s17_s22 = int_to_ptr.hbm [resolvable:$true] %s16_s22 }
   0x4   :  { %s1226_s23 = smov 128   ;;  %s1227_s24 = smov 8  }
   0x5   :  { %37 = dma.hbm_to_vmem [thread:$0]  %s30_s17, 4096, %s32_s19, [#allocation6], %s1226_s23, %s1226_s23, %s1227_s24  }
   0x6   :  { %s1228_s25 = smov [#allocation2]   ;;  %s42_s29 = sshll.u32 %s1429_s2, 4  ;;  %s43_s29 = int_to_ptr.hbm [resolvable:$true] %s42_s29 }
   0x7   :  { %s18_s26 = sshll.u32 %s1228_s25, 4  ;;  %s1229_s1 = smov [#allocation7]   ;;  %s19_s26 = int_to_ptr.vmem [resolvable:$true] %s18_s26 }
   0x8   :  { %24 = dma.hbm_to_vmem [thread:$0]  %s17_s22, 512, %s19_s26, [#allocation3], %s1226_s23, %s1226_s23, %s1227_s24  }
   0x9   :  { %s44_s30 = sshll.u32 %s1229_s1, 4  ;;  %s45_s30 = int_to_ptr.vmem [resolvable:$true] %s44_s30 }
   0xa   :  { %50 = dma.hbm_to_vmem [thread:$0]  %s43_s29, 2048, %s45_s30, [#allocation6], %s1226_s23, %s1226_s23, %s1227_s24  }
   0xb   :  { %1219 = dma.done.wait [#allocation3], 512  }
   0xc   :  { %1220 = vsyncadd [#allocation3], 4294966784 }
   0xd   :  { %1221 = dma.done.wait [#allocation6], 6144  }
   0xe   :  { %1222 = vsyncadd [#allocation6], 4294961152  ;;  %v840_v0 = vld [vmem:[#allocation7 + $0x70] sm:$0xf]  ;;  %v1061_v1 = vld [vmem:[#allocation7 + $0x74] sm:$0xf0]  ;;  %v69_v33 = vlaneseq }
   0xf   :  { %v1060_v2 = vld [vmem:[#allocation7 + $0x74] sm:$0xf]  ;;  %v841_v3 = vor.u32 %v1061_v1, %v840_v0  ;;  %v842_v4 = vld [vmem:[#allocation7 + $0x78] sm:$0xf0]  ;;  %v920_v5 = vld [vmem:[#allocation5 + $0x70] sm:$0xf] }
  0x10   :  { %v1029_v6 = vld [vmem:[#allocation5 + $0x74] sm:$0xf0]  ;;  %v845_v7 = vor.u32 %v1060_v2, %v842_v4  ;;  %v984_v9 = vld [vmem:[#allocation5 + $0xf0] sm:$0xf]  ;;  %v832_v11 = vld [vmem:[#allocation7 + $0x60] sm:$0xf] }
  0x11   :  { %v921_v8 = vor.u32 %v1029_v6, %v920_v5  ;;  %v1045_v10 = vld [vmem:[#allocation5 + $0xf4] sm:$0xf0]  ;;  %306 = vmatpush.bf16.msra.mxu0 %v841_v3  ;;  %v1059_v13 = vld [vmem:[#allocation7 + $0x64] sm:$0xf0]  ;;  %v1058_v14 = vld [vmem:[#allocation7 + $0x64] sm:$0xf] }
  0x12   :  { %v985_v12 = vor.u32 %v1045_v10, %v984_v9  ;;  %v834_v15 = vld [vmem:[#allocation7 + $0x68] sm:$0xf0]  ;;  %325 = vmatpush.bf16.msra.mxu1 %v845_v7  ;;  %v833_v16 = vor.u32 %v1059_v13, %v832_v11  ;;  %v912_v18 = vld [vmem:[#allocation5 + $0x60] sm:$0xf]  ;;  %v1027_v19 = vld [vmem:[#allocation5 + $0x64] sm:$0xf0] }
  0x13   :  { %504 = vmatpush.bf16.msra.mxu2 %v921_v8  ;;  %v837_v17 = vor.u32 %v1058_v14, %v834_v15  ;;  %v976_v20 = vld [vmem:[#allocation5 + $0xe0] sm:$0xf]  ;;  %v913_v21 = vor.u32 %v1027_v19, %v912_v18  ;;  %v1043_v22 = vld [vmem:[#allocation5 + $0xe4] sm:$0xf0]  ;;  %v824_v23 = vld [vmem:[#allocation7 + $0x50] sm:$0xf] }
  0x14   :  { %523 = vmatpush.bf16.msra.mxu3 %v985_v12  ;;  %v1057_v24 = vld [vmem:[#allocation7 + $0x54] sm:$0xf0]  ;;  %v977_v25 = vor.u32 %v1043_v22, %v976_v20  ;;  %v1056_v26 = vld [vmem:[#allocation7 + $0x54] sm:$0xf]  ;;  %v826_v27 = vld [vmem:[#allocation7 + $0x58] sm:$0xf0] }
  0x15   :  { %v904_v28 = vld [vmem:[#allocation5 + $0x50] sm:$0xf]  ;;  %307 = vmatpush.bf16.msra.mxu0 %v833_v16  ;;  %v825_v29 = vor.u32 %v1057_v24, %v824_v23  ;;  %v1025_v30 = vld [vmem:[#allocation5 + $0x54] sm:$0xf0]  ;;  %v829_v34 = vor.u32 %v1056_v26, %v826_v27  ;;  %v816_v36 = vld [vmem:[#allocation7 + $0x40] sm:$0xf] }
  0x16   :  { %v968_v31 = vld [vmem:[#allocation5 + $0xd0] sm:$0xf]  ;;  %v1041_v32 = vld [vmem:[#allocation5 + $0xd4] sm:$0xf0]  ;;  %326 = vmatpush.bf16.msra.mxu1 %v837_v17  ;;  %v905_v35 = vor.u32 %v1025_v30, %v904_v28  ;;  %v1055_v37 = vld [vmem:[#allocation7 + $0x44] sm:$0xf0] }
  0x17   :  { %505 = vmatpush.bf16.msra.mxu2 %v913_v21  ;;  %v1054_v38 = vld [vmem:[#allocation7 + $0x44] sm:$0xf]  ;;  %v969_v39 = vor.u32 %v1041_v32, %v968_v31  ;;  %v818_v40 = vld [vmem:[#allocation7 + $0x48] sm:$0xf0]  ;;  %v896_v41 = vld [vmem:[#allocation5 + $0x40] sm:$0xf]  ;;  %v817_v45 = vor.u32 %v1055_v37, %v816_v36 }
  0x18   :  { %524 = vmatpush.bf16.msra.mxu3 %v977_v25  ;;  %v1023_v42 = vld [vmem:[#allocation5 + $0x44] sm:$0xf0]  ;;  %v960_v43 = vld [vmem:[#allocation5 + $0xc0] sm:$0xf]  ;;  %v1268_v46 = vshrl.u32 %v69_v33, 7  ;;  %v821_v47 = vor.u32 %v1054_v38, %v818_v40  ;;  %v1277_v28 = vld [vmem:[#allocation2 + $0x10] sm:$0xff] }
  0x19   :  { %v1039_v44 = vld [vmem:[#allocation5 + $0xc4] sm:$0xf0]  ;;  %308 = vmatpush.bf16.msra.mxu0 %v825_v29  ;;  %v897_v48 = vor.u32 %v1023_v42, %v896_v41  ;;  %v808_v49 = vld [vmem:[#allocation7 + $0x30] sm:$0xf]  ;;  %v1053_v50 = vld [vmem:[#allocation7 + $0x34] sm:$0xf0] }
  0x1a   :  { %327 = vmatpush.bf16.msra.mxu1 %v829_v34  ;;  %v1052_v51 = vld [vmem:[#allocation7 + $0x34] sm:$0xf]  ;;  %v961_v52 = vor.u32 %v1039_v44, %v960_v43  ;;  %v810_v53 = vld [vmem:[#allocation7 + $0x38] sm:$0xf0]  ;;  %v888_v54 = vld [vmem:[#allocation5 + $0x30] sm:$0xf]  ;;  %v809_v58 = vor.u32 %v1053_v50, %v808_v49 }
  0x1b   :  { %506 = vmatpush.bf16.msra.mxu2 %v905_v35  ;;  %v1021_v55 = vld [vmem:[#allocation5 + $0x34] sm:$0xf0]  ;;  %v952_v56 = vld [vmem:[#allocation5 + $0xb0] sm:$0xf]  ;;  %v800_v59 = vld [vmem:[#allocation7 + $0x20] sm:$0xf]  ;;  %v813_v62 = vor.u32 %v1052_v51, %v810_v53 }
  0x1c   :  { %525 = vmatpush.bf16.msra.mxu3 %v969_v39  ;;  %v1037_v57 = vld [vmem:[#allocation5 + $0xb4] sm:$0xf0]  ;;  %v1051_v60 = vld [vmem:[#allocation7 + $0x24] sm:$0xf0]  ;;  %v1271_v61 = vadd.s32 8, %v1268_v46  ;;  %v889_v63 = vor.u32 %v1021_v55, %v888_v54  ;;  %v1273_v21 = vld [vmem:[#allocation2] sm:$0xff] }
  0x1d   :  { %309 = vmatpush.bf16.msra.mxu0 %v817_v45  ;;  %v1050_v0 = vld [vmem:[#allocation7 + $0x24] sm:$0xf]  ;;  %v802_v1 = vld [vmem:[#allocation7 + $0x28] sm:$0xf0]  ;;  %v880_v2 = vld [vmem:[#allocation5 + $0x20] sm:$0xf]  ;;  %v953_v3 = vor.u32 %v1037_v57, %v952_v56  ;;  %v801_v10 = vor.u32 %v1051_v60, %v800_v59 }
  0x1e   :  { %328 = vmatpush.bf16.msra.mxu1 %v821_v47  ;;  %v1019_v4 = vld [vmem:[#allocation5 + $0x24] sm:$0xf0]  ;;  %v944_v5 = vld [vmem:[#allocation5 + $0xa0] sm:$0xf]  ;;  %v792_v7 = vld [vmem:[#allocation7 + $0x10] sm:$0xf]  ;;  %v805_v14 = vor.u32 %v1050_v0, %v802_v1 }
  0x1f   :  { %507 = vmatpush.bf16.msra.mxu2 %v897_v48  ;;  %v1035_v6 = vld [vmem:[#allocation5 + $0xa4] sm:$0xf0]  ;;  %v1049_v8 = vld [vmem:[#allocation7 + $0x14] sm:$0xf0]  ;;  %v1048_v9 = vld [vmem:[#allocation7 + $0x14] sm:$0xf]  ;;  %v881_v15 = vor.u32 %v1019_v4, %v880_v2 }
  0x20   :  { %526 = vmatpush.bf16.msra.mxu3 %v961_v52  ;;  %v794_v11 = vld [vmem:[#allocation7 + $0x18] sm:$0xf0]  ;;  %v872_v12 = vld [vmem:[#allocation5 + $0x10] sm:$0xf]  ;;  %v1017_v13 = vld [vmem:[#allocation5 + $0x14] sm:$0xf0]  ;;  %v945_v18 = vor.u32 %v1035_v6, %v944_v5  ;;  %v793_v23 = vor.u32 %v1049_v8, %v792_v7 }
  0x21   :  { %310 = vmatpush.bf16.msra.mxu0 %v809_v58  ;;  %v936_v16 = vld [vmem:[#allocation5 + $0x90] sm:$0xf]  ;;  %v1033_v17 = vld [vmem:[#allocation5 + $0x94] sm:$0xf0]  ;;  %v784_v19 = vld [vmem:[#allocation7] sm:$0xf]  ;;  %v797_v24 = vor.u32 %v1048_v9, %v794_v11  ;;  %v873_v25 = vor.u32 %v1017_v13, %v872_v12 }
  0x22   :  { %329 = vmatpush.bf16.msra.mxu1 %v813_v62  ;;  %v1047_v20 = vld [vmem:[#allocation7 + $0x4] sm:$0xf0]  ;;  %v1046_v26 = vld [vmem:[#allocation7 + $0x4] sm:$0xf]  ;;  %v786_v27 = vld [vmem:[#allocation7 + $0x8] sm:$0xf0]  ;;  %v937_v39 = vor.u32 %v1033_v17, %v936_v16 }
  0x23   :  { %508 = vmatpush.bf16.msra.mxu2 %v889_v63  ;;  %v1275_v22 = vld [vmem:[#allocation2 + $0x8] sm:$0xff]  ;;  %v1279_v29 = vld [vmem:[#allocation2 + $0x18] sm:$0xff]  ;;  %v864_v30 = vld [vmem:[#allocation5] sm:$0xf]  ;;  %v85_v31 = vand.u32 15, %v1271_v61  ;;  %v151_v32 = vrot.slane %v1273_v21, 1  ;;  %v785_v42 = vor.u32 %v1047_v20, %v784_v19  ;;  %v789_v47 = vor.u32 %v1046_v26, %v786_v27 }
  0x24   :  { %527 = vmatpush.bf16.msra.mxu3 %v953_v3  ;;  %v152_v33 = vrot.slane %v1275_v22, 1  ;;  %v153_v34 = vrot.slane %v1277_v28, 1  ;;  %v1015_v35 = vld [vmem:[#allocation5 + $0x4] sm:$0xf0]  ;;  %vm155_vm0 = vcmp.lt.s32.totalorder %v1268_v46, 7  ;;  %v126_v36 = vrot.slane %v1273_v21, 7 }
  0x25   :  { %311 = vmatpush.bf16.msra.mxu0 %v801_v10  ;;  %v127_v37 = vrot.slane %v1275_v22, 7  ;;  %v129_v38 = vrot.slane %v1279_v29, 7  ;;  %v928_v40 = vld [vmem:[#allocation5 + $0x80] sm:$0xf]  ;;  %v78_v41 = vand.u32 15, %v1268_v46  ;;  %vm130_vm1 = vcmp.lt.s32.totalorder %v1268_v46, 1 }
  0x26   :  { %330 = vmatpush.bf16.msra.mxu1 %v805_v14  ;;  %v1031_v43 = vld [vmem:[#allocation5 + $0x84] sm:$0xf0]  ;;  %v1028_v44 = vld [vmem:[#allocation5 + $0x74] sm:$0xf]  ;;  %v922_v45 = vld [vmem:[#allocation5 + $0x78] sm:$0xf0]  ;;  %v865_v48 = vor.u32 %v1015_v35, %v864_v30  ;;  %v157_v49 = vsel %vm155_vm0, %v152_v33, %v153_v34  ;;  %v158_v50 = vsel %vm155_vm0, %v151_v32, %v152_v33  ;;  %v1321_v2 = vpack.c.bf16 %v1275_v22, %v1273_v21 }
  0x27   :  { %509 = vmatpush.bf16.msra.mxu2 %v881_v15  ;;  %v1044_v51 = vld [vmem:[#allocation5 + $0xf4] sm:$0xf]  ;;  %v986_v52 = vld [vmem:[#allocation5 + $0xf8] sm:$0xf0]  ;;  %vm1062_vm2 = vcmp.ne.s32.totalorder %v85_v31, 15  ;;  %v133_v53 = vsel %vm130_vm1, %v126_v36, %v127_v37  ;;  %v134_v54 = vsel %vm130_vm1, %v129_v38, %v126_v36  ;;  %v929_v55 = vor.u32 %v1031_v43, %v928_v40  ;;  %s768_s8 = sshll.u32 %s1431_s4, 4  ;;  %s769_s8 = int_to_ptr.hbm [resolvable:$true] %s768_s8 }
  0x28   :  { %528 = vmatpush.bf16.msra.mxu3 %v945_v18  ;;  %vm1064_vm3 = vcmp.ne.s32.totalorder %v78_v41, 0  ;;  %v925_v56 = vor.u32 %v1028_v44, %v922_v45  ;;  %v848_v57 = vpack.c.bf16 %v157_v49, %v158_v50  ;;  %v989_v58 = vor.u32 %v1044_v51, %v986_v52  ;;  %v1026_v59 = vld [vmem:[#allocation5 + $0x64] sm:$0xf]  ;;  %v914_v60 = vld [vmem:[#allocation5 + $0x68] sm:$0xf0]  ;;  %s1232_s9 = smov 256  }
  0x29   :  { %312 = vmatpush.bf16.msra.mxu0 %v793_v23  ;;  %vm1230_vm4 = vmmov 1   ;;  %v1312_v62 = vpack.c.bf16 %v133_v53, %v134_v54  ;;  %v1042_v63 = vld [vmem:[#allocation5 + $0xe4] sm:$0xf]  ;;  %v978_v0 = vld [vmem:[#allocation5 + $0xe8] sm:$0xf0]  ;;  %v917_v3 = vor.u32 %v1026_v59, %v914_v60  ;;  %v73_v9 = vadd.s32 24, %v1268_v46 }
  0x2a   :  { %331 = vmatpush.bf16.msra.mxu1 %v797_v24  ;;  %vm1308_vm5 = vmpackc.low %vm1062_vm2, %vm1230_vm4  ;;  %v981_v4 = vor.u32 %v1042_v63, %v978_v0  ;;  %v1024_v5 = vld [vmem:[#allocation5 + $0x54] sm:$0xf]  ;;  %v906_v6 = vld [vmem:[#allocation5 + $0x58] sm:$0xf0]  ;;  %v72_v11 = vadd.s32 16, %v1268_v46  ;;  %v154_v17 = vrot.slane %v1279_v29, 1  ;;  %v175_v46 = vpack.c.bf16 %v1279_v29, %v1277_v28 }
  0x2b   :  { %510 = vmatpush.bf16.msra.mxu2 %v873_v25  ;;  %vm1315_vm6 = vmpackc.low %vm1230_vm4, %vm1064_vm3  ;;  %v1040_v7 = vld [vmem:[#allocation5 + $0xd4] sm:$0xf]  ;;  %v970_v8 = vld [vmem:[#allocation5 + $0xd8] sm:$0xf0]  ;;  %v909_v10 = vor.u32 %v1024_v5, %v906_v6  ;;  %v99_v18 = vand.u32 15, %v73_v9  ;;  %v128_v19 = vrot.slane %v1277_v28, 7 }
  0x2c   :  { %529 = vmatpush.bf16.msra.mxu3 %v937_v39  ;;  %v973_v12 = vor.u32 %v1040_v7, %v970_v8  ;;  %v1022_v13 = vld [vmem:[#allocation5 + $0x44] sm:$0xf]  ;;  %v898_v14 = vld [vmem:[#allocation5 + $0x48] sm:$0xf0]  ;;  %v92_v23 = vand.u32 15, %v72_v11  ;;  %v156_v27 = vsel %vm155_vm0, %v153_v34, %v154_v17  ;;  %v159_v30 = vsel %vm155_vm0, %v154_v17, %v151_v32  ;;  %s1233_s10 = smov 16  }
  0x2d   :  { %313 = vmatpush.bf16.msra.mxu0 %v785_v42  ;;  %v1038_v15 = vld [vmem:[#allocation5 + $0xc4] sm:$0xf]  ;;  %v962_v16 = vld [vmem:[#allocation5 + $0xc8] sm:$0xf0]  ;;  %v901_v20 = vor.u32 %v1022_v13, %v898_v14  ;;  %v1020_v25 = vld [vmem:[#allocation5 + $0x34] sm:$0xf]  ;;  %v131_v35 = vsel %vm130_vm1, %v128_v19, %v129_v38  ;;  %v132_v36 = vsel %vm130_vm1, %v127_v37, %v128_v19  ;;  %v852_v32 = vpack.c.bf16 %v159_v30, %v156_v27 }
  0x2e   :  { %332 = vmatpush.bf16.msra.mxu1 %v789_v47  ;;  %v965_v24 = vor.u32 %v1038_v15, %v962_v16  ;;  %v890_v26 = vld [vmem:[#allocation5 + $0x38] sm:$0xf0]  ;;  %v1036_v31 = vld [vmem:[#allocation5 + $0xb4] sm:$0xf]  ;;  %vm1063_vm7 = vcmp.ne.s32.totalorder %v99_v18, 15  ;;  %vm1065_vm8 = vcmp.ne.s32.totalorder %v92_v23, 0  ;;  %v996_v41 = vpack.c.bf16 %v131_v35, %v132_v36 }
  0x2f   :  { %511 = vmatpush.bf16.msra.mxu2 %v865_v48  ;;  %v954_v33 = vld [vmem:[#allocation5 + $0xb8] sm:$0xf0]  ;;  %v893_v21 = vor.u32 %v1020_v25, %v890_v26  ;;  %v1018_v39 = vld [vmem:[#allocation5 + $0x24] sm:$0xf]  ;;  %v882_v40 = vld [vmem:[#allocation5 + $0x28] sm:$0xf0] }
  0x30   :  { %530 = vmatpush.bf16.msra.mxu3 %v929_v55  ;;  %849 = vmatmul.msk.bf16.vlgmr.msra.gmra.mxu0 %vm1308_vm5, %v848_v57  ;;  %v957_v34 = vor.u32 %v1036_v31, %v954_v33  ;;  %vm851_vm9 = vmpackc.low %vm1063_vm7, %vm1230_vm4  ;;  %v1034_v42 = vld [vmem:[#allocation5 + $0xa4] sm:$0xf]  ;;  %v946_v43 = vld [vmem:[#allocation5 + $0xa8] sm:$0xf0]  ;;  %v885_v37 = vor.u32 %v1018_v39, %v882_v40 }
  0x31   :  { %857 = vmatmul.msk.bf16.vlgmr.msra.gmra.mxu1 %vm1308_vm5, %v848_v57  ;;  %542 = vmatpush.bf16.msrb.mxu0 %v925_v56  ;;  %vm1353_vm10 = vmpackc.low %vm1230_vm4, %vm1065_vm8  ;;  %v949_v38 = vor.u32 %v1034_v42, %v946_v43  ;;  %v1016_v44 = vld [vmem:[#allocation5 + $0x14] sm:$0xf]  ;;  %v874_v45 = vld [vmem:[#allocation5 + $0x18] sm:$0xf0] }
  0x32   :  { %561 = vmatpush.bf16.msrb.mxu1 %v989_v58  ;;  %993 = vmatmul.msk.bf16.vlgmr.msra.gmra.mxu2 %vm1315_vm6, %v1312_v62  ;;  %v1032_v47 = vld [vmem:[#allocation5 + $0x94] sm:$0xf]  ;;  %v938_v48 = vld [vmem:[#allocation5 + $0x98] sm:$0xf0]  ;;  %v877_v49 = vor.u32 %v1016_v44, %v874_v45  ;;  %v1014_v29 = vld [vmem:[#allocation5 + $0x4] sm:$0xf] }
  0x33   :  { %1066 = vmatpush.bf16.msrb.mxu2 %v925_v56  ;;  %531 = vmatmul.bf16.vlgmr.msra.gmra.mxu3 %v1321_v2  ;;  %v941_v28 = vor.u32 %v1032_v47, %v938_v48  ;;  %v866_v50 = vld [vmem:[#allocation5 + $0x8] sm:$0xf0]  ;;  %v1030_v51 = vld [vmem:[#allocation5 + $0x84] sm:$0xf]  ;;  %v580_v57 = vld [vmem:[%s1430_s3] sm:$0x3] }
  0x34   :  { %1074 = vmatpush.bf16.msrb.mxu3 %v989_v58  ;;  %v930_v52 = vld [vmem:[#allocation5 + $0x88] sm:$0xf0]  ;;  %v869_v53 = vor.u32 %v1014_v29, %v866_v50  ;;  %v582_v61 = vperm.slane %v580_v57, 0  ;;  %s1231_s3 = smov [#allocation8]  }
  0x35   :  { %543 = vmatpush.bf16.msrb.mxu0 %v917_v3  ;;  %v933_v54 = vor.u32 %v1030_v51, %v930_v52  ;;  %s766_s5 = sshll.u32 %s1231_s3, 4  ;;  %s767_s5 = int_to_ptr.vmem [resolvable:$true] %s766_s5 }
  0x36   :  { %562 = vmatpush.bf16.msrb.mxu1 %v981_v4 }
  0x37   :  { %1067 = vmatpush.bf16.msrb.mxu2 %v917_v3 }
  0x38   :  { %1075 = vmatpush.bf16.msrb.mxu3 %v981_v4 }
  0x39   :  { %544 = vmatpush.bf16.msrb.mxu0 %v909_v10 }
  0x3a   :  { %563 = vmatpush.bf16.msrb.mxu1 %v973_v12 }
  0x3b   :  { %1068 = vmatpush.bf16.msrb.mxu2 %v909_v10 }
  0x3c   :  { %1076 = vmatpush.bf16.msrb.mxu3 %v973_v12 }
  0x3d   :  { %545 = vmatpush.bf16.msrb.mxu0 %v901_v20 }
  0x3e   :  { %564 = vmatpush.bf16.msrb.mxu1 %v965_v24 }
  0x3f   :  { %1069 = vmatpush.bf16.msrb.mxu2 %v901_v20 }
  0x40   :  { %1077 = vmatpush.bf16.msrb.mxu3 %v965_v24  ;;  %853 = vmatmul.msk.bf16.gmra.mxu0 %vm851_vm9, %v852_v32 }
  0x41   :  { %861 = vmatmul.msk.bf16.gmra.mxu1 %vm851_vm9, %v852_v32  ;;  %546 = vmatpush.bf16.msrb.mxu0 %v893_v21 }
  0x42   :  { %565 = vmatpush.bf16.msrb.mxu1 %v957_v34  ;;  %997 = vmatmul.msk.bf16.gmra.mxu2 %vm1353_vm10, %v996_v41 }
  0x43   :  { %1070 = vmatpush.bf16.msrb.mxu2 %v893_v21  ;;  %536 = vmatmul.bf16.gmra.mxu3 %v175_v46 }
  0x44   :  { %1078 = vmatpush.bf16.msrb.mxu3 %v957_v34  ;;  %v1383_v34 = vperm.slane %v580_v57, 1 }
  0x45   :  { %547 = vmatpush.bf16.msrb.mxu0 %v885_v37 }
  0x46   :  { %566 = vmatpush.bf16.msrb.mxu1 %v949_v38 }
  0x47   :  { %1071 = vmatpush.bf16.msrb.mxu2 %v885_v37 }
  0x48   :  { %1079 = vmatpush.bf16.msrb.mxu3 %v949_v38 }
  0x49   :  { %548 = vmatpush.bf16.msrb.mxu0 %v877_v49 }
  0x4a   :  { %567 = vmatpush.bf16.msrb.mxu1 %v941_v28 }
  0x4b   :  { %1072 = vmatpush.bf16.msrb.mxu2 %v877_v49 }
  0x4c   :  { %1080 = vmatpush.bf16.msrb.mxu3 %v941_v28 }
  0x4d   :  { %549 = vmatpush.bf16.msrb.mxu0 %v869_v53 }
  0x4e   :  { %568 = vmatpush.bf16.msrb.mxu1 %v933_v54 }
  0x4f   :  { %1073 = vmatpush.bf16.msrb.mxu2 %v869_v53 }
  0x50   :  { %1081 = vmatpush.bf16.msrb.mxu3 %v933_v54  ;;  %1001 = vmatmul.msk.bf16.vlgmr.msrb.gmra.mxu0 %vm1315_vm6, %v1312_v62 }
  0x51   :  { %569 = vmatmul.bf16.vlgmr.msrb.gmra.mxu1 %v1321_v2 }
  0x52   :  { %1005 = vmatmul.msk.bf16.vlgmr.msrb.gmra.mxu2 %vm1353_vm10, %v996_v41 }
  0x53   :  { %574 = vmatmul.bf16.vlgmr.msrb.gmra.mxu3 %v175_v46 }
  0xad   :  { %v315_v55 = vpop.f32.mrf.mxu0 }
  0xae   :  { %v334_v56 = vpop.f32.mrf.mxu1 }
  0xb5   :  { %v513_v58 = vpop.f32.mrf.mxu2  ;;  %v317_v63 = vpop.f32.mrf.mxu0 }
  0xb6   :  { %v514_v59 = vadd.f32 %v513_v58, %v315_v55  ;;  %v532_v60 = vpop.f32.mrf.mxu3  ;;  %v1370_v0 = vpop.f32.mrf.mxu1 }
  0xb8   :  { %v533_v62 = vadd.f32 %v532_v60, %v514_v59 }
  0xba   :  { %v586_v1 = vadd.f32 %v582_v61, %v533_v62 }
  0xbc   :  { %v1006_v3 = vmul.f32 -1.442695, %v586_v1 }
  0xbd   :  { %v515_v4 = vpop.f32.mrf.mxu2  ;;  %v320_v6 = vpop.f32.mrf.mxu0 }
  0xbe   :  { %1091 = vpow2.f32 %v1006_v3  ;;  %v516_v2 = vadd.f32 %v515_v4, %v317_v63  ;;  %v534_v5 = vpop.f32.mrf.mxu3  ;;  %v339_v7 = vpop.f32.mrf.mxu1 }
  0xc0   :  { %v535_v8 = vadd.f32 %v534_v5, %v516_v2 }
  0xc2   :  { %v1372_v9 = vadd.f32 %v582_v61, %v535_v8 }
  0xc4   :  { %v1092_v10 = vpop.eup %1091  ;;  %v1008_v11 = vmul.f32 -1.442695, %v1372_v9 }
  0xc5   :  { %v618_v12 = vadd.f32 1.0, %v1092_v10  ;;  %v518_v13 = vpop.f32.mrf.mxu2  ;;  %v322_v16 = vpop.f32.mrf.mxu0 }
  0xc6   :  { %1093 = vpow2.f32 %v1008_v11  ;;  %v519_v14 = vadd.f32 %v518_v13, %v320_v6  ;;  %v537_v15 = vpop.f32.mrf.mxu3  ;;  %v1375_v17 = vpop.f32.mrf.mxu1 }
  0xc7   :  { %1095 = vrcp.f32 %v618_v12  ;;  %v635_v39 = vand.u32 2147483647, %v618_v12  ;;  %v637_v40 = vand.u32 2147483648, %v618_v12  ;;  %vm631_vm12 = vweird.f32 %v618_v12 }
  0xc8   :  { %v538_v18 = vadd.f32 %v537_v15, %v519_v14 }
  0xc9   :  { %v638_v45 = vor.u32 1.1754944e-38, %v637_v40  ;;  %vm636_vm14 = vcmp.eq.f32.partialorder %v635_v39, 8.507059e+37 }
  0xca   :  { %v1377_v19 = vadd.f32 %v582_v61, %v538_v18 }
  0xcc   :  { %v1094_v20 = vpop.eup %1093  ;;  %v1010_v23 = vmul.f32 -1.442695, %v1377_v19 }
  0xcd   :  { %v1096_v24 = vpop.eup %1095  ;;  %v1380_v25 = vadd.f32 1.0, %v1094_v20  ;;  %v520_v26 = vpop.f32.mrf.mxu2 }
  0xce   :  { %v627_v27 = vmul.f32 %v1096_v24, %v618_v12  ;;  %1097 = vpow2.f32 %v1010_v23  ;;  %v521_v30 = vadd.f32 %v520_v26, %v322_v16  ;;  %v539_v31 = vpop.f32.mrf.mxu3  ;;  %v551_v33 = vpop.f32.mrf.mxu0  ;;  %vm632_vm11 = vweird.f32 %v1096_v24 }
  0xcf   :  { %1099 = vrcp.f32 %v1380_v25  ;;  %v552_v21 = vadd.f32 %v551_v33, %v334_v56  ;;  %v570_v32 = vpop.f32.mrf.mxu1  ;;  %vm633_vm13 = vmor %vm631_vm12, %vm632_vm11  ;;  %v667_v55 = vand.u32 2147483648, %v1380_v25  ;;  %v665_v59 = vand.u32 2147483647, %v1380_v25 }
  0xd0   :  { %v628_v35 = vsub.f32 1.0, %v627_v27  ;;  %v540_v36 = vadd.f32 %v539_v31, %v521_v30  ;;  %vm661_vm0 = vweird.f32 %v1380_v25 }
  0xd1   :  { %v571_v43 = vadd.f32 %v570_v32, %v552_v21  ;;  %v668_v4 = vor.u32 1.1754944e-38, %v667_v55  ;;  %vm666_vm2 = vcmp.eq.f32.partialorder %v665_v59, 8.507059e+37 }
  0xd2   :  { %v629_v41 = vmul.f32 %v1096_v24, %v628_v35  ;;  %v1385_v42 = vadd.f32 %v582_v61, %v540_v36 }
  0xd3   :  { %v1389_v38 = vadd.f32 %v1383_v34, %v571_v43 }
  0xd4   :  { %v1098_v22 = vpop.eup %1097  ;;  %v630_v46 = vadd.f32 %v1096_v24, %v629_v41  ;;  %v1012_v37 = vmul.f32 -1.442695, %v1385_v42 }
  0xd5   :  { %v1100_v44 = vpop.eup %1099  ;;  %v1391_v47 = vadd.f32 1.0, %v1098_v22  ;;  %v556_v48 = vpop.f32.mrf.mxu2  ;;  %v1007_v54 = vmul.f32 -1.442695, %v1389_v38 }
  0xd6   :  { %v634_v49 = vsel %vm633_vm13, %v1096_v24, %v630_v46  ;;  %v657_v28 = vmul.f32 %v1100_v44, %v1380_v25  ;;  %1101 = vpow2.f32 %v1012_v37  ;;  %v575_v29 = vpop.f32.mrf.mxu3  ;;  %v553_v51 = vpop.f32.mrf.mxu0  ;;  %v557_v56 = vadd.f32 %v556_v48, %v339_v7 }
  0xd7   :  { %v639_v50 = vsel %vm636_vm14, %v638_v45, %v634_v49  ;;  %1103 = vrcp.f32 %v1391_v47  ;;  %v554_v57 = vadd.f32 %v553_v51, %v1370_v0  ;;  %vm662_vm15 = vweird.f32 %v1100_v44  ;;  %v572_v60 = vpop.f32.mrf.mxu1 }
  0xd8   :  { %v746_v52 = vmul.f32 %v639_v50, %v586_v1  ;;  %v658_v53 = vsub.f32 1.0, %v657_v28  ;;  %1105 = vpow2.f32 %v1007_v54  ;;  %v576_v61 = vadd.f32 %v575_v29, %v557_v56  ;;  %vm663_vm1 = vmor %vm661_vm0, %vm662_vm15 }
  0xd9   :  { %v573_v63 = vadd.f32 %v572_v60, %v554_v57  ;;  %v697_v18 = vand.u32 2147483648, %v1391_v47  ;;  %vm691_vm4 = vweird.f32 %v1391_v47 }
  0xda   :  { %754 = vst [vmem:[#allocation8] sm:$0xff] %v746_v52  ;;  %v659_v58 = vmul.f32 %v1100_v44, %v658_v53  ;;  %v1401_v5 = vadd.f32 %v1383_v34, %v576_v61 }
  0xdb   :  { %v1404_v0 = vadd.f32 %v1383_v34, %v573_v63  ;;  %v698_v30 = vor.u32 1.1754944e-38, %v697_v18 }
  0xdc   :  { %v1102_v62 = vpop.eup %1101  ;;  %v660_v3 = vadd.f32 %v1100_v44, %v659_v58  ;;  %v1011_v15 = vmul.f32 -1.442695, %v1401_v5 }
  0xdd   :  { %v1104_v1 = vpop.eup %1103  ;;  %v624_v2 = vadd.f32 1.0, %v1102_v62  ;;  %v558_v6 = vpop.f32.mrf.mxu2  ;;  %v1009_v23 = vmul.f32 -1.442695, %v1404_v0 }
  0xde   :  { %v664_v7 = vsel %vm663_vm1, %v1100_v44, %v660_v3  ;;  %v687_v8 = vmul.f32 %v1104_v1, %v1391_v47  ;;  %v559_v10 = vadd.f32 %v558_v6, %v1375_v17  ;;  %v1106_v12 = vpop.eup %1105  ;;  %v577_v16 = vpop.f32.mrf.mxu3  ;;  %vm692_vm3 = vweird.f32 %v1104_v1 }
  0xdf   :  { %v669_v11 = vsel %vm666_vm2, %v668_v4, %v664_v7  ;;  %1107 = vrcp.f32 %v624_v2  ;;  %v619_v20 = vadd.f32 1.0, %v1106_v12  ;;  %v695_v17 = vand.u32 2147483647, %v1391_v47  ;;  %vm693_vm5 = vmor %vm691_vm4, %vm692_vm3 }
  0xe0   :  { %v748_v13 = vmul.f32 %v669_v11, %v1372_v9  ;;  %v688_v14 = vsub.f32 1.0, %v687_v8  ;;  %v578_v24 = vadd.f32 %v577_v16, %v559_v10  ;;  %1109 = vpow2.f32 %v1011_v15 }
  0xe1   :  { %1111 = vrcp.f32 %v619_v20  ;;  %vm696_vm6 = vcmp.eq.f32.partialorder %v695_v17, 8.507059e+37  ;;  %v725_v41 = vand.u32 2147483647, %v624_v2  ;;  %v727_v43 = vand.u32 2147483648, %v624_v2 }
  0xe2   :  { %756 = vst [vmem:[#allocation8 + $0x10] sm:$0xff] %v748_v13  ;;  %v689_v25 = vmul.f32 %v1104_v1, %v688_v14  ;;  %1113 = vpow2.f32 %v1009_v23  ;;  %v1415_v9 = vadd.f32 %v1383_v34, %v578_v24  ;;  %vm721_vm8 = vweird.f32 %v624_v2 }
  0xe3   :  { %vm726_vm10 = vcmp.eq.f32.partialorder %v725_v41, 8.507059e+37  ;;  %v728_v48 = vor.u32 1.1754944e-38, %v727_v43  ;;  %v652_v49 = vand.u32 2147483648, %v619_v20  ;;  %vm646_vm12 = vweird.f32 %v619_v20 }
  0xe4   :  { %v690_v26 = vadd.f32 %v1104_v1, %v689_v25  ;;  %v1013_v35 = vmul.f32 -1.442695, %v1415_v9 }
  0xe5   :  { %v1108_v27 = vpop.eup %1107  ;;  %v653_v56 = vor.u32 1.1754944e-38, %v652_v49 }
  0xe6   :  { %v694_v31 = vsel %vm693_vm5, %v1104_v1, %v690_v26  ;;  %v717_v33 = vmul.f32 %v1108_v27, %v624_v2  ;;  %v1110_v21 = vpop.eup %1109  ;;  %1115 = vpow2.f32 %v1013_v35  ;;  %vm722_vm7 = vweird.f32 %v1108_v27 }
  0xe7   :  { %v699_v36 = vsel %vm696_vm6, %v698_v30, %v694_v31  ;;  %v1112_v40 = vpop.eup %1111  ;;  %v623_v22 = vadd.f32 1.0, %v1110_v21  ;;  %vm723_vm9 = vmor %vm721_vm8, %vm722_vm7 }
  0xe8   :  { %v750_v32 = vmul.f32 %v699_v36, %v1377_v19  ;;  %v718_v39 = vsub.f32 1.0, %v717_v33  ;;  %v1114_v34 = vpop.eup %1113  ;;  %v642_v37 = vmul.f32 %v1112_v40, %v619_v20  ;;  %v650_v19 = vand.u32 2147483647, %v619_v20 }
  0xe9   :  { %1117 = vrcp.f32 %v623_v22  ;;  %v621_v47 = vadd.f32 1.0, %v1114_v34  ;;  %vm647_vm11 = vweird.f32 %v1112_v40  ;;  %v712_v62 = vand.u32 2147483648, %v623_v22 }
  0xea   :  { %758 = vst [vmem:[#allocation8 + $0x20] sm:$0xff] %v750_v32  ;;  %v719_v46 = vmul.f32 %v1108_v27, %v718_v39  ;;  %v643_v45 = vsub.f32 1.0, %v642_v37  ;;  %vm648_vm13 = vmor %vm646_vm12, %vm647_vm11  ;;  %vm651_vm14 = vcmp.eq.f32.partialorder %v650_v19, 8.507059e+37  ;;  %vm706_vm0 = vweird.f32 %v623_v22 }
  0xeb   :  { %1119 = vrcp.f32 %v621_v47  ;;  %v682_v6 = vand.u32 2147483648, %v621_v47  ;;  %v713_v10 = vor.u32 1.1754944e-38, %v712_v62  ;;  %v680_v12 = vand.u32 2147483647, %v621_v47 }
  0xec   :  { %v720_v44 = vadd.f32 %v1108_v27, %v719_v46  ;;  %v1116_v28 = vpop.eup %1115  ;;  %v644_v50 = vmul.f32 %v1112_v40, %v643_v45  ;;  %vm676_vm4 = vweird.f32 %v621_v47 }
  0xed   :  { %v625_v52 = vadd.f32 1.0, %v1116_v28  ;;  %v683_v16 = vor.u32 1.1754944e-38, %v682_v6  ;;  %vm681_vm7 = vcmp.eq.f32.partialorder %v680_v12, 8.507059e+37 }
  0xee   :  { %v724_v29 = vsel %vm723_vm9, %v1108_v27, %v720_v44  ;;  %v645_v54 = vadd.f32 %v1112_v40, %v644_v50 }
  0xef   :  { %v729_v51 = vsel %vm726_vm10, %v728_v48, %v724_v29  ;;  %v1118_v55 = vpop.eup %1117  ;;  %1121 = vrcp.f32 %v625_v52  ;;  %v742_v18 = vand.u32 2147483648, %v625_v52  ;;  %v740_v24 = vand.u32 2147483647, %v625_v52 }
  0xf0   :  { %v752_v53 = vmul.f32 %v729_v51, %v1385_v42  ;;  %v649_v57 = vsel %vm648_vm13, %v1112_v40, %v645_v54  ;;  %v702_v58 = vmul.f32 %v1118_v55, %v623_v22  ;;  %vm707_vm15 = vweird.f32 %v1118_v55 }
  0xf1   :  { %v654_v59 = vsel %vm651_vm14, %v653_v56, %v649_v57  ;;  %v1120_v60 = vpop.eup %1119  ;;  %v710_v42 = vand.u32 2147483647, %v623_v22  ;;  %vm708_vm1 = vmor %vm706_vm0, %vm707_vm15  ;;  %vm736_vm8 = vweird.f32 %v625_v52  ;;  %vm741_vm10 = vcmp.eq.f32.partialorder %v740_v24, 8.507059e+37 }
  0xf2   :  { %760 = vst [vmem:[#allocation8 + $0x30] sm:$0xff] %v752_v53  ;;  %v747_v61 = vmul.f32 %v654_v59, %v1389_v38  ;;  %v703_v63 = vsub.f32 1.0, %v702_v58  ;;  %v672_v3 = vmul.f32 %v1120_v60, %v621_v47  ;;  %vm677_vm2 = vweird.f32 %v1120_v60 }
  0xf3   :  { %vm711_vm3 = vcmp.eq.f32.partialorder %v710_v42, 8.507059e+37  ;;  %vm678_vm5 = vmor %vm676_vm4, %vm677_vm2 }
  0xf4   :  { %755 = vst [vmem:[#allocation8 + $0x8] sm:$0xff] %v747_v61  ;;  %v704_v1 = vmul.f32 %v1118_v55, %v703_v63  ;;  %v673_v2 = vsub.f32 1.0, %v672_v3 }
  0xf5   :  { %v1122_v4 = vpop.eup %1121 }
  0xf6   :  { %v705_v7 = vadd.f32 %v1118_v55, %v704_v1  ;;  %v732_v8 = vmul.f32 %v1122_v4, %v625_v52  ;;  %v674_v11 = vmul.f32 %v1120_v60, %v673_v2  ;;  %vm737_vm6 = vweird.f32 %v1122_v4 }
  0xf7   :  { %vm738_vm9 = vmor %vm736_vm8, %vm737_vm6 }
  0xf8   :  { %v709_v13 = vsel %vm708_vm1, %v1118_v55, %v705_v7  ;;  %v733_v38 = vsub.f32 1.0, %v732_v8  ;;  %v675_v15 = vadd.f32 %v1120_v60, %v674_v11 }
  0xf9   :  { %v714_v14 = vsel %vm711_vm3, %v713_v10, %v709_v13 }
  0xfa   :  { %v751_v20 = vmul.f32 %v714_v14, %v1401_v5  ;;  %v734_v23 = vmul.f32 %v1122_v4, %v733_v38  ;;  %v679_v25 = vsel %vm678_vm5, %v1120_v60, %v675_v15  ;;  %v743_v5 = vor.u32 1.1754944e-38, %v742_v18 }
  0xfb   :  { %v684_v17 = vsel %vm681_vm7, %v683_v16, %v679_v25 }
  0xfc   :  { %759 = vst [vmem:[#allocation8 + $0x28] sm:$0xff] %v751_v20  ;;  %v735_v26 = vadd.f32 %v1122_v4, %v734_v23  ;;  %v749_v27 = vmul.f32 %v684_v17, %v1404_v0 }
  0xfe   :  { %v739_v30 = vsel %vm738_vm9, %v1122_v4, %v735_v26  ;;  %757 = vst [vmem:[#allocation8 + $0x18] sm:$0xff] %v749_v27 }
  0xff   :  { %v744_v31 = vsel %vm741_vm10, %v743_v5, %v739_v30 }
 0x100   :  { %v753_v33 = vmul.f32 %v744_v31, %v1415_v9 }
 0x102   :  { %761 = vst [vmem:[#allocation8 + $0x38] sm:$0xff] %v753_v33 }
 0x103   :  { %774 = dma.vmem_to_hbm [thread:$0]  %s767_s5, 1024, %s769_s8, [#allocation4], %s1232_s9, %s1232_s9, %s1233_s10  }
 0x104   :  { %1223 = dma.done.wait [#allocation4], 1024  }
 0x105   :  { %1224 = vsyncadd [#allocation4], 4294966272 }
 0x106   :  { %779 = vsyncpa [#allocation3], 1 }
 0x107   :  { %780 = vsyncpa [#allocation6], 1 }
 0x108   :  { %781 = vsyncpa [#allocation4], 1 }

</bundles_post_ra>
